<compile_context>
chip_gen: v5e
topology: v5e:2x2
jax: 0.10.0
libtpu: 0.0.40
codegen_flags: <defaults>
</compile_context>

<pallas_src>
import jax
import jax.numpy as jnp
from jax.experimental import pallas as pl
from jax.experimental.pallas import tpu as pltpu

MEAN = 0.5
STD = 0.5
BACKGROUND = (0.2, 0.4, 0.6)   # deterministic Composit(*args) background color (RGB)

_INV_STD = 1.0 / STD           # Normalize as fused scale+bias: x*(1/s) + (-m/s)
_NORM_BIAS = -MEAN / STD

_TARGET_BLOCK_ELEMS = 256 * 1024   # f32 elems per channel-plane per block
                                   # -> 2 (dbl buf) * 7 planes * 1 MiB ~= 14 MiB VMEM
_VMEM_LIMIT = 32 * 1024 * 1024     # fits v5e/v6e/v7x scoped VMEM with headroom


def _composite_normalize_kernel(x_ref, o_ref):
    """x_ref: (4, TR, L) planar RGBA tile; o_ref: (3, TR, L) normalized RGB tile."""
    alpha = x_ref[3]                 # (TR, L)
    inv_alpha = 1.0 - alpha
    for c in range(3):               # unrolled over the 3 output channel planes
        comp = x_ref[c] * alpha + BACKGROUND[c] * inv_alpha        # Composit
        o_ref[c] = comp * _INV_STD + _NORM_BIAS                    # Normalize(0.5, 0.5)


def _planar_layout(H, W):
    """Pick (R, L) with R*L == H*W and L a lane-dense multiple of 128 if possible."""
    P = H * W
    for lanes in (512, 256, 128):
        if P % lanes == 0:
            return P // lanes, lanes
    # Fallback: keep (H, W) spatial layout (W < 128 => masked stores; rare shapes only).
    return H, W


def _row_tile(R, L):
    """Largest row-block TR that divides R, keeps the block within the VMEM budget,
    is sublane-aligned (multiple of 8, or the full R), and -- when the image is big
    enough -- leaves >= 2 grid steps so megacore (v7x) can shard the parallel axis."""
    cap = max(1, _TARGET_BLOCK_ELEMS // L)

    def search(limit):
        for tr in range(min(R, limit), 0, -1):
            if R % tr == 0 and (tr % 8 == 0 or tr == R):
                return tr
        return R

    tr = search(cap)
    if R // tr < 2 and R >= 16:      # prefer a multi-step parallel grid
        tr2 = search(R // 2)
        if tr2 % 8 == 0:
            tr = tr2
    return tr


def normalized_composit_planar(x_planar):
    """Core entry point. x_planar: (4, R, L) f32 channel-planar RGBA (R*L == H*W).
    Returns (3, R, L) f32 normalized composite."""
    C, R, L = x_planar.shape
    assert C == 4, "expects planar RGBA"
    tr = _row_tile(R, L)
    return pl.pallas_call(
        _composite_normalize_kernel,
        out_shape=jax.ShapeDtypeStruct((3, R, L), jnp.float32),
        grid_spec=pl.GridSpec(
            grid=(R // tr,),
            in_specs=[pl.BlockSpec((4, tr, L), lambda i: (0, i, 0))],
            out_specs=pl.BlockSpec((3, tr, L), lambda i: (0, i, 0)),
        ),
        compiler_params=pltpu.CompilerParams(
            dimension_semantics=("parallel",),
            vmem_limit_bytes=_VMEM_LIMIT,
        ),
    )(x_planar)


def normalized_composit(x_hwc):
    """Drop-in forward of NormalizedCompositLayer: (H, W, 4) RGBA -> (1, 3, H, W)."""
    H, W, C = x_hwc.shape
    assert C == 4, "expects an RGBA HWC image"
    R, L = _planar_layout(H, W)
    # HWC -> channel-planar. TODO(synk): see header -- this is the one remaining
    # out-of-kernel pass; feed planar data via normalized_composit_planar to skip it.
    x = jnp.transpose(x_hwc.astype(jnp.float32), (2, 0, 1)).reshape(4, R, L)
    out = normalized_composit_planar(x)          # (3, R, L)
    return out.reshape(3, H, W)[None]            # free views: CHW + AddBatchDim


if __name__ == "__main__":
    key = jax.random.PRNGKey(0)
    H, W = 16, 16
    x = jax.random.uniform(key, (H, W, 4), dtype=jnp.float32)   # RGBA in [0, 1)

    fwd = jax.jit(normalized_composit)
    out = jax.block_until_ready(fwd(x))

    # Pure-JAX reference of the same forward pass.
    rgb, alpha = x[..., :3], x[..., 3:4]
    bg = jnp.asarray(BACKGROUND, jnp.float32)
    comp = rgb * alpha + bg * (1.0 - alpha)               # Composit          (H, W, 3)
    ref = (jnp.transpose(comp, (2, 0, 1)) - MEAN) / STD   # HWC2CHW + Normalize
    ref = ref[None]                                       # AddBatchDim       (1, 3, H, W)

    assert out.shape == (1, 3, H, W), out.shape
    assert out.dtype == jnp.float32
    assert jnp.allclose(out, ref, atol=1e-6), float(jnp.max(jnp.abs(out - ref)))
    print("KERNEL_OK")
</pallas_src>

<mosaic_0001>
module attributes {stable_mosaic.version = 11 : i64} {
  func.func @_composite_normalize_kernel(%arg0: i32, %arg1: memref<4x1x256xf32, #tpu.memory_space<vmem>>, %arg2: memref<3x1x256xf32, #tpu.memory_space<vmem>>) attributes {dimension_semantics = [#tpu.dimension_semantics<parallel>], iteration_bounds = array<i64: 1>, scalar_prefetch = 0 : i64, scratch_operands = 0 : i64, tpu.core_type = #tpu.core_type<tc>, window_params = [{transform_indices = @transform_0, window_bounds = array<i64: 4, 1, 256>}, {transform_indices = @transform_1, window_bounds = array<i64: 3, 1, 256>}]} {
    %c3 = arith.constant 3 : index
    %c0 = arith.constant 0 : index
    %c0_0 = arith.constant 0 : index
    %0 = vector.load %arg1[%c3, %c0, %c0_0] : memref<4x1x256xf32, #tpu.memory_space<vmem>>, vector<1x1x256xf32>
    %1 = vector.shape_cast %0 : vector<1x1x256xf32> to vector<1x256xf32>
    %cst = arith.constant 1.000000e+00 : f32
    %2 = vector.broadcast %cst : f32 to vector<1x256xf32>
    %3 = arith.subf %2, %1 : vector<1x256xf32>
    %c0_1 = arith.constant 0 : index
    %c0_2 = arith.constant 0 : index
    %c0_3 = arith.constant 0 : index
    %4 = vector.load %arg1[%c0_1, %c0_2, %c0_3] : memref<4x1x256xf32, #tpu.memory_space<vmem>>, vector<1x1x256xf32>
    %5 = vector.shape_cast %4 : vector<1x1x256xf32> to vector<1x256xf32>
    %6 = arith.mulf %5, %1 : vector<1x256xf32>
    %cst_4 = arith.constant 2.000000e-01 : f32
    %7 = vector.broadcast %cst_4 : f32 to vector<1x256xf32>
    %8 = arith.mulf %7, %3 : vector<1x256xf32>
    %9 = arith.addf %6, %8 : vector<1x256xf32>
    %cst_5 = arith.constant 2.000000e+00 : f32
    %10 = vector.broadcast %cst_5 : f32 to vector<1x256xf32>
    %11 = arith.mulf %9, %10 : vector<1x256xf32>
    %cst_6 = arith.constant -1.000000e+00 : f32
    %12 = vector.broadcast %cst_6 : f32 to vector<1x256xf32>
    %13 = arith.addf %11, %12 : vector<1x256xf32>
    %c0_7 = arith.constant 0 : index
    %c0_8 = arith.constant 0 : index
    %c0_9 = arith.constant 0 : index
    %14 = vector.load %arg2[%c0_7, %c0_8, %c0_9] : memref<3x1x256xf32, #tpu.memory_space<vmem>>, vector<1x1x256xf32>
    %15 = vector.shape_cast %14 : vector<1x1x256xf32> to vector<1x256xf32>
    %16 = vector.shape_cast %13 : vector<1x256xf32> to vector<1x1x256xf32>
    tpu.vector_store %arg2[%c0_7, %c0_8, %c0_9], %16 {strides = array<i32>} : memref<3x1x256xf32, #tpu.memory_space<vmem>>, vector<1x1x256xf32>,
    %c1 = arith.constant 1 : index
    %c0_10 = arith.constant 0 : index
    %c0_11 = arith.constant 0 : index
    %17 = vector.load %arg1[%c1, %c0_10, %c0_11] : memref<4x1x256xf32, #tpu.memory_space<vmem>>, vector<1x1x256xf32>
    %18 = vector.shape_cast %17 : vector<1x1x256xf32> to vector<1x256xf32>
    %19 = arith.mulf %18, %1 : vector<1x256xf32>
    %cst_12 = arith.constant 4.000000e-01 : f32
    %20 = vector.broadcast %cst_12 : f32 to vector<1x256xf32>
    %21 = arith.mulf %20, %3 : vector<1x256xf32>
    %22 = arith.addf %19, %21 : vector<1x256xf32>
    %cst_13 = arith.constant 2.000000e+00 : f32
    %23 = vector.broadcast %cst_13 : f32 to vector<1x256xf32>
    %24 = arith.mulf %22, %23 : vector<1x256xf32>
    %cst_14 = arith.constant -1.000000e+00 : f32
    %25 = vector.broadcast %cst_14 : f32 to vector<1x256xf32>
    %26 = arith.addf %24, %25 : vector<1x256xf32>
    %c1_15 = arith.constant 1 : index
    %c0_16 = arith.constant 0 : index
    %c0_17 = arith.constant 0 : index
    %27 = vector.load %arg2[%c1_15, %c0_16, %c0_17] : memref<3x1x256xf32, #tpu.memory_space<vmem>>, vector<1x1x256xf32>
    %28 = vector.shape_cast %27 : vector<1x1x256xf32> to vector<1x256xf32>
    %29 = vector.shape_cast %26 : vector<1x256xf32> to vector<1x1x256xf32>
    tpu.vector_store %arg2[%c1_15, %c0_16, %c0_17], %29 {strides = array<i32>} : memref<3x1x256xf32, #tpu.memory_space<vmem>>, vector<1x1x256xf32>,
    %c2 = arith.constant 2 : index
    %c0_18 = arith.constant 0 : index
    %c0_19 = arith.constant 0 : index
    %30 = vector.load %arg1[%c2, %c0_18, %c0_19] : memref<4x1x256xf32, #tpu.memory_space<vmem>>, vector<1x1x256xf32>
    %31 = vector.shape_cast %30 : vector<1x1x256xf32> to vector<1x256xf32>
    %32 = arith.mulf %31, %1 : vector<1x256xf32>
    %cst_20 = arith.constant 6.000000e-01 : f32
    %33 = vector.broadcast %cst_20 : f32 to vector<1x256xf32>
    %34 = arith.mulf %33, %3 : vector<1x256xf32>
    %35 = arith.addf %32, %34 : vector<1x256xf32>
    %cst_21 = arith.constant 2.000000e+00 : f32
    %36 = vector.broadcast %cst_21 : f32 to vector<1x256xf32>
    %37 = arith.mulf %35, %36 : vector<1x256xf32>
    %cst_22 = arith.constant -1.000000e+00 : f32
    %38 = vector.broadcast %cst_22 : f32 to vector<1x256xf32>
    %39 = arith.addf %37, %38 : vector<1x256xf32>
    %c2_23 = arith.constant 2 : index
    %c0_24 = arith.constant 0 : index
    %c0_25 = arith.constant 0 : index
    %40 = vector.load %arg2[%c2_23, %c0_24, %c0_25] : memref<3x1x256xf32, #tpu.memory_space<vmem>>, vector<1x1x256xf32>
    %41 = vector.shape_cast %40 : vector<1x1x256xf32> to vector<1x256xf32>
    %42 = vector.shape_cast %39 : vector<1x256xf32> to vector<1x1x256xf32>
    tpu.vector_store %arg2[%c2_23, %c0_24, %c0_25], %42 {strides = array<i32>} : memref<3x1x256xf32, #tpu.memory_space<vmem>>, vector<1x1x256xf32>,
    return
  }
  func.func @transform_0(%arg0: i32) -> (i32, i32, i32) {
    %c0_i32 = arith.constant 0 : i32
    %c0_i32_0 = arith.constant 0 : i32
    %c0_i32_1 = arith.constant 0 : i32
    return %c0_i32, %arg0, %c0_i32_0 : i32, i32, i32
  }
  func.func @transform_1(%arg0: i32) -> (i32, i32, i32) {
    %c0_i32 = arith.constant 0 : i32
    %c0_i32_0 = arith.constant 0 : i32
    %c0_i32_1 = arith.constant 0 : i32
    return %c0_i32, %arg0, %c0_i32_0 : i32, i32, i32
  }
}

</mosaic_0001>

<bundles_post_ra>
// kernel: normalized_composit.1
= control target key start
LH: loop header
LB: loop body
LE: loop exit
PB: predicated region body
PF: predicated region fallthrough
CT: control target
= control target key end

     0   :  { %v17_v11 = vlaneseq  ;;  %s80_s0 = inlined_call_operand.vmem [shape: f32[4,1,256], index: 0, kind: input, shape index: {}]   ;;  %s81_s1 = inlined_call_operand.vmem [shape: f32[3,1,256], index: 1, kind: output, shape index: {}]  }
   0x1   :  { %v44_v0 = vld [vmem:[%s80_s0 + $0x6] sm:$0x3]  ;;  %v11_v1 = vld [vmem:[%s80_s0] sm:$0x3]  ;;  %v45_v2 = vld [vmem:[%s80_s0 + $0x2] sm:$0x3] }
   0x2   :  { %v10_v3 = vsub.f32 1.0, %v44_v0  ;;  %v12_v4 = vmul.f32 %v44_v0, %v11_v1  ;;  %v24_v5 = vmul.f32 %v45_v2, %v44_v0  ;;  %v47_v6 = vld [vmem:[%s80_s0 + $0x4] sm:$0x3]  ;;  %vm19_vm0 = vcmp.lt.s32.totalorder %v17_v11, 256 }
   0x3   :  { %v33_v7 = vmul.f32 %v47_v6, %v44_v0 }
   0x4   :  { %v13_v8 = vmul.f32 0.2, %v10_v3  ;;  %v25_v9 = vmul.f32 0.4, %v10_v3  ;;  %v34_v10 = vmul.f32 0.6, %v10_v3 }
   0x6   :  { %v14_v12 = vadd.f32 %v13_v8, %v12_v4  ;;  %v26_v13 = vadd.f32 %v25_v9, %v24_v5  ;;  %v35_v14 = vadd.f32 %v34_v10, %v33_v7 }
   0x8   :  { %v15_v15 = vmul.f32 2.0, %v14_v12  ;;  %v27_v16 = vmul.f32 2.0, %v26_v13  ;;  %v36_v17 = vmul.f32 2.0, %v35_v14 }
   0xa   :  { %v16_v18 = vadd.f32 -1.0, %v15_v15  ;;  %v28_v19 = vadd.f32 -1.0, %v27_v16  ;;  %v37_v20 = vadd.f32 -1.0, %v36_v17 }
   0xc   :  { %21 = vst.msk [vmem:[%s81_s1] sm:$0x3] %vm19_vm0, %v16_v18 }
   0xd   :  { %46 = vst.msk [vmem:[%s81_s1 + $0x2] sm:$0x3] %vm19_vm0, %v28_v19 }
   0xe   :  { %48 = vst.msk [vmem:[%s81_s1 + $0x4] sm:$0x3] %vm19_vm0, %v37_v20 }

</bundles_post_ra>
